<compile_context>
chip_gen: v7x
topology: tpu7x:2x2x1
jax: 0.10.0
libtpu: 0.0.40
codegen_flags: <defaults>
</compile_context>

<pallas_src>
import functools
import math

import jax
import jax.numpy as jnp
from jax.experimental import pallas as pl
from jax.experimental.pallas import tpu as pltpu


# ----------------------------------------------------------------------------
# Fused Pallas kernel: one batch block of the whole TGCN cell
# ----------------------------------------------------------------------------
def _tgcn_cell_kernel(cat_ref, h_ref, lfull_ref, w1_ref, b1_ref,
                      w2x_ref, w2h_ref, b2_ref, o_ref, *, num_feat):
    """Shapes per grid step (M = batch_block * N):
       cat_ref (M, F+H) = [x | h] row-stacked by batch     h_ref (M, H)
       lfull_ref (3M, M) = [blkdiag(L); Dr@blkdiag(L); Du@blkdiag(L)]
       w1 (F+H, 2H)  b1 (1, 2H)   w2x (F, H)  w2h (H, H)  b2 (1, H)
       o_ref (M, H)
    """
    M = cat_ref.shape[0]
    H = w2h_ref.shape[0]

    cat = cat_ref[...]                      # (M, F+H)
    h = h_ref[...]                          # (M, H)
    lfull = lfull_ref[...]                  # (3M, M)

    # --- one push: rows [:M] = L@[x|h] (lx reuse), rows [M:] = r/u source rows ----
    a = jnp.dot(lfull, cat, preferred_element_type=jnp.float32)        # (3M, F+H)

    # --- gate path: one push against the FULL W1, bias added before the select ---
    z = jnp.dot(a[M:, :], w1_ref[...],
                preferred_element_type=jnp.float32) + b1_ref[...]       # (2M, 2H)

    # torch.chunk on the node-major flattened gc1: row parity picks the column half
    # (valid because N and M are even, so row parity == node-index parity).
    even = (jax.lax.broadcasted_iota(jnp.int32, (2 * M, H), 0) % 2) == 0
    sel = jnp.where(even, z[:, :H], z[:, H:])
    ru = jax.nn.sigmoid(sel)                # (2M, H): rows [:M] = r, rows [M:] = u
    r = ru[:M, :]
    u = ru[M:, :]

    # --- graph_conv2 on [x | r*h]: reuse L@x = a[:M, :F] --------------------------
    lx = a[:M, :num_feat]                                               # (M, F)
    lrh = jnp.dot(lfull[:M, :], r * h,
                  preferred_element_type=jnp.float32)                   # (M, H)
    c = jnp.tanh(
        jnp.dot(lx, w2x_ref[...], preferred_element_type=jnp.float32)
        + jnp.dot(lrh, w2h_ref[...], preferred_element_type=jnp.float32)
        + b2_ref[...])                                                  # (M, H)

    # --- GRU gate update (fused epilogue) -----------------------------------------
    o_ref[...] = u * h + (1.0 - u) * c


# ----------------------------------------------------------------------------
# Wrapper: host-side constant folding, layout plumbing, pallas_call setup
# ----------------------------------------------------------------------------
def tgcn_cell(x, hidden, lap, W1, b1, W2, b2, hidden_dim, batch_block=None):
    """TGCNCell.forward: returns (new_hidden_state, new_hidden_state).

    x: (B, N, F=17) f32, hidden: (B, N*H) f32, lap: (N, N),
    W1: (F+H, 2H), b1: (2H,), W2: (F+H, H), b2: (H,).
    """
    B, N, F = x.shape
    H = hidden_dim
    assert F == 17, "TGCNGraphConvolution hardcodes num_gru_units + 17 weight rows"
    assert W1.shape == (F + H, 2 * H) and W2.shape == (F + H, H)
    # The fused r/u extraction assumes N is even (true for real T-GCN graphs);
    # odd N would split a node's channels across the torch.chunk boundary.
    assert N % 2 == 0, "fused TGCN kernel requires an even number of nodes"

    # Batch blocking: keep >=128 MXU rows when B is large, whole batch when small.
    bblk = batch_block if batch_block is not None else min(B, 8)
    while B % bblk:
        bblk -= 1
    M = bblk * N

    h_rows = hidden.reshape(B * N, H)
    cat_rows = jnp.concatenate([x.reshape(B * N, F), h_rows], axis=1)   # (B*N, F+H)

    # Host-precomputed constant folding:
    #   blkdiag(L) applies the Laplacian per batch element on row-stacked activations,
    #   Dr/Du duplicate the rows torch.chunk would read for r / u.
    lapf = lap.astype(jnp.float32)
    eye_b = jnp.eye(bblk, dtype=jnp.float32)
    n_idx = jnp.arange(N)
    dr_small = jax.nn.one_hot(n_idx // 2, N, dtype=jnp.float32)             # (N, N)
    du_small = jax.nn.one_hot(N // 2 + n_idx // 2, N, dtype=jnp.float32)    # (N, N)
    lblk = jnp.kron(eye_b, lapf)                                             # (M, M)
    lfull = jnp.concatenate(
        [lblk, jnp.kron(eye_b, dr_small @ lapf), jnp.kron(eye_b, du_small @ lapf)],
        axis=0)                                                              # (3M, M)

    W2x, W2h = W2[:F, :], W2[F:, :]
    b1r = b1.reshape(1, 2 * H)
    b2r = b2.reshape(1, H)

    kernel = functools.partial(_tgcn_cell_kernel, num_feat=F)
    const = lambda g: (0, 0)
    out = pl.pallas_call(
        kernel,
        out_shape=jax.ShapeDtypeStruct((B * N, H), jnp.float32),
        grid=(B // bblk,),
        in_specs=[
            pl.BlockSpec((M, F + H), lambda g: (g, 0)),   # cat rows (batch block)
            pl.BlockSpec((M, H), lambda g: (g, 0)),       # hidden rows (batch block)
            pl.BlockSpec((3 * M, M), const),              # Lfull (constant)
            pl.BlockSpec((F + H, 2 * H), const),          # W1
            pl.BlockSpec((1, 2 * H), const),              # b1
            pl.BlockSpec((F, H), const),                  # W2[:F]
            pl.BlockSpec((H, H), const),                  # W2[F:]
            pl.BlockSpec((1, H), const),                  # b2
        ],
        out_specs=pl.BlockSpec((M, H), lambda g: (g, 0)),
        compiler_params=pltpu.CompilerParams(dimension_semantics=("parallel",)),
    )(cat_rows, h_rows, lfull, W1, b1r, W2x, W2h, b2r)

    new_hidden = out.reshape(B, N * H)
    return new_hidden, new_hidden


# ----------------------------------------------------------------------------
# Parameter / buffer construction (matches torch init semantics)
# ----------------------------------------------------------------------------
def calculate_laplacian_with_self_loop(adj):
    m = adj + jnp.eye(adj.shape[0], dtype=adj.dtype)
    row_sum = m.sum(axis=1)
    d_inv_sqrt = jnp.power(row_sum, -0.5)
    d_inv_sqrt = jnp.where(jnp.isinf(d_inv_sqrt), 0.0, d_inv_sqrt)
    d = jnp.diag(d_inv_sqrt)
    return (m @ d).T @ d


def xavier_uniform(key, shape):
    fan_in, fan_out = shape
    bound = math.sqrt(6.0 / (fan_in + fan_out))
    return jax.random.uniform(key, shape, jnp.float32, -bound, bound)


# ----------------------------------------------------------------------------
# Pure-JAX reference following the PyTorch code line-by-line (for checking)
# ----------------------------------------------------------------------------
def _graph_conv_ref(x, hidden_flat, lap, W, bias, H):
    B, N, F = x.shape
    h = hidden_flat.reshape(B, N, H)
    cat = jnp.concatenate([x, h], axis=2)                      # (B, N, F+H)
    cat = jnp.transpose(cat, (1, 2, 0)).reshape(N, (F + H) * B)
    a = lap @ cat
    a = a.reshape(N, F + H, B)
    a = jnp.transpose(a, (2, 0, 1)).reshape(B * N, F + H)
    out = a @ W + bias
    return out.reshape(B, N * W.shape[1])


def _tgcn_cell_ref(x, hidden, lap, W1, b1, W2, b2, H):
    gc1 = jax.nn.sigmoid(_graph_conv_ref(x, hidden, lap, W1, b1, H))
    r, u = jnp.split(gc1, 2, axis=1)
    c = jnp.tanh(_graph_conv_ref(x, r * hidden, lap, W2, b2, H))
    return u * hidden + (1.0 - u) * c


# ----------------------------------------------------------------------------
if __name__ == "__main__":
    B, N, H, F = 2, 16, 32, 17   # batch, num_nodes, hidden_dim, features (must be 17)

    key = jax.random.PRNGKey(0)
    k_adj, k_x, k_h, k_w1, k_w2 = jax.random.split(key, 5)

    # deterministic synthetic adjacency (symmetric, zero diagonal)
    a = jax.random.uniform(k_adj, (N, N), jnp.float32)
    adj = 0.5 * (a + a.T) * (1.0 - jnp.eye(N, dtype=jnp.float32))
    lap = calculate_laplacian_with_self_loop(adj)

    # graph_conv1: output_dim = 2H, bias init 1.0 ; graph_conv2: output_dim = H, bias 0.0
    W1 = xavier_uniform(k_w1, (H + 17, 2 * H))
    b1 = jnp.full((2 * H,), 1.0, jnp.float32)
    W2 = xavier_uniform(k_w2, (H + 17, H))
    b2 = jnp.zeros((H,), jnp.float32)

    x = jax.random.normal(k_x, (B, N, F), jnp.float32)
    hidden = jax.random.normal(k_h, (B, N * H), jnp.float32)

    new_hidden, out = tgcn_cell(x, hidden, lap, W1, b1, W2, b2, H)
    new_hidden = jax.block_until_ready(new_hidden)

    ref = _tgcn_cell_ref(x, hidden, lap, W1, b1, W2, b2, H)
    max_err = float(jnp.max(jnp.abs(new_hidden - ref)))
    assert jnp.allclose(new_hidden, ref, atol=1e-4, rtol=1e-4), f"max_err={max_err}"

    print("KERNEL_OK")
</pallas_src>

<mosaic_0001>
module attributes {stable_mosaic.version = 11 : i64} {
  func.func @_tgcn_cell_kernel(%arg0: i32, %arg1: memref<32x49xf32, #tpu.memory_space<vmem>>, %arg2: memref<32x32xf32, #tpu.memory_space<vmem>>, %arg3: memref<96x32xf32, #tpu.memory_space<vmem>>, %arg4: memref<49x64xf32, #tpu.memory_space<vmem>>, %arg5: memref<1x64xf32, #tpu.memory_space<vmem>>, %arg6: memref<17x32xf32, #tpu.memory_space<vmem>>, %arg7: memref<32x32xf32, #tpu.memory_space<vmem>>, %arg8: memref<1x32xf32, #tpu.memory_space<vmem>>, %arg9: memref<32x32xf32, #tpu.memory_space<vmem>>) attributes {dimension_semantics = [#tpu.dimension_semantics<parallel>], iteration_bounds = array<i64: 1>, scalar_prefetch = 0 : i64, scratch_operands = 0 : i64, tpu.core_type = #tpu.core_type<tc>, window_params = [{transform_indices = @transform_0, window_bounds = array<i64: 32, 49>}, {transform_indices = @transform_1, window_bounds = array<i64: 32, 32>}, {pipeline_mode = #tpu.pipeline_mode<synchronous>, transform_indices = @transform_2, window_bounds = array<i64: 96, 32>}, {pipeline_mode = #tpu.pipeline_mode<synchronous>, transform_indices = @transform_3, window_bounds = array<i64: 49, 64>}, {pipeline_mode = #tpu.pipeline_mode<synchronous>, transform_indices = @transform_4, window_bounds = array<i64: 1, 64>}, {pipeline_mode = #tpu.pipeline_mode<synchronous>, transform_indices = @transform_5, window_bounds = array<i64: 17, 32>}, {pipeline_mode = #tpu.pipeline_mode<synchronous>, transform_indices = @transform_6, window_bounds = array<i64: 32, 32>}, {pipeline_mode = #tpu.pipeline_mode<synchronous>, transform_indices = @transform_7, window_bounds = array<i64: 1, 32>}, {transform_indices = @transform_8, window_bounds = array<i64: 32, 32>}]} {
    %c0 = arith.constant 0 : index
    %c0_0 = arith.constant 0 : index
    %0 = vector.load %arg1[%c0, %c0_0] : memref<32x49xf32, #tpu.memory_space<vmem>>, vector<32x49xf32>
    %c0_1 = arith.constant 0 : index
    %c0_2 = arith.constant 0 : index
    %1 = vector.load %arg2[%c0_1, %c0_2] : memref<32x32xf32, #tpu.memory_space<vmem>>, vector<32x32xf32>
    %c0_3 = arith.constant 0 : index
    %c0_4 = arith.constant 0 : index
    %2 = vector.load %arg3[%c0_3, %c0_4] : memref<96x32xf32, #tpu.memory_space<vmem>>, vector<96x32xf32>
    %cst = arith.constant dense<0.000000e+00> : vector<96x49xf32>
    %3 = tpu.matmul %2, %0, %cst {dimension_numbers = #tpu.dot_dimension_numbers<[1], [0], [0], [1], [0, 0, 1, 1], [], []>} : vector<96x32xf32>, vector<32x49xf32>, vector<96x49xf32> -> vector<96x49xf32>
    %4 = vector.extract_strided_slice %3 {offsets = [32, 0], sizes = [64, 49], strides = [1, 1]} : vector<96x49xf32> to vector<64x49xf32>
    %c0_5 = arith.constant 0 : index
    %c0_6 = arith.constant 0 : index
    %5 = vector.load %arg4[%c0_5, %c0_6] : memref<49x64xf32, #tpu.memory_space<vmem>>, vector<49x64xf32>
    %cst_7 = arith.constant dense<0.000000e+00> : vector<64x64xf32>
    %6 = tpu.matmul %4, %5, %cst_7 {dimension_numbers = #tpu.dot_dimension_numbers<[1], [0], [0], [1], [0, 0, 1, 1], [], []>} : vector<64x49xf32>, vector<49x64xf32>, vector<64x64xf32> -> vector<64x64xf32>
    %c0_8 = arith.constant 0 : index
    %c0_9 = arith.constant 0 : index
    %7 = vector.load %arg5[%c0_8, %c0_9] : memref<1x64xf32, #tpu.memory_space<vmem>>, vector<1x64xf32>
    %8 = vector.broadcast %7 : vector<1x64xf32> to vector<64x64xf32>
    %9 = arith.addf %6, %8 : vector<64x64xf32>
    %10 = tpu.iota {dimensions = array<i32: 0>} : vector<64x32xi32>
    %c2_i32 = arith.constant 2 : i32
    %c0_i32 = arith.constant 0 : i32
    %11 = arith.cmpi eq, %c2_i32, %c0_i32 : i32
    %c1_i32 = arith.constant 1 : i32
    %12 = arith.select %11, %c1_i32, %c2_i32 : i32
    %13 = vector.broadcast %12 : i32 to vector<64x32xi32>
    %14 = arith.remsi %10, %13 : vector<64x32xi32>
    %c0_i32_10 = arith.constant 0 : i32
    %15 = vector.broadcast %c0_i32_10 : i32 to vector<64x32xi32>
    %16 = arith.cmpi ne, %14, %15 : vector<64x32xi32>
    %c0_i32_11 = arith.constant 0 : i32
    %17 = vector.broadcast %c0_i32_11 : i32 to vector<64x32xi32>
    %18 = arith.cmpi slt, %14, %17 : vector<64x32xi32>
    %c0_i32_12 = arith.constant 0 : i32
    %19 = arith.cmpi slt, %12, %c0_i32_12 : i32
    %20 = vector.broadcast %19 : i1 to vector<64x32xi1>
    %21 = vector.broadcast %20 : vector<64x32xi1> to vector<64x32xi1>
    %22 = arith.xori %18, %21 : vector<64x32xi1>
    %23 = arith.andi %22, %16 : vector<64x32xi1>
    %24 = vector.broadcast %12 : i32 to vector<64x32xi32>
    %25 = arith.addi %14, %24 : vector<64x32xi32>
    %26 = arith.select %23, %25, %14 : vector<64x32xi1>, vector<64x32xi32>
    %c0_i32_13 = arith.constant 0 : i32
    %27 = vector.broadcast %c0_i32_13 : i32 to vector<64x32xi32>
    %28 = arith.cmpi eq, %26, %27 : vector<64x32xi32>
    %29 = vector.extract_strided_slice %9 {offsets = [0, 0], sizes = [64, 32], strides = [1, 1]} : vector<64x64xf32> to vector<64x32xf32>
    %30 = vector.extract_strided_slice %9 {offsets = [0, 32], sizes = [64, 32], strides = [1, 1]} : vector<64x64xf32> to vector<64x32xf32>
    %31 = arith.select %28, %29, %30 : vector<64x32xi1>, vector<64x32xf32>
    %32 = arith.negf %31 : vector<64x32xf32>
    %33 = math.exp %32 : vector<64x32xf32>
    %cst_14 = arith.constant 1.000000e+00 : f32
    %34 = vector.broadcast %cst_14 : f32 to vector<64x32xf32>
    %35 = arith.addf %34, %33 : vector<64x32xf32>
    %36 = arith.divf %34, %35 : vector<64x32xf32>
    %37 = vector.extract_strided_slice %36 {offsets = [0, 0], sizes = [32, 32], strides = [1, 1]} : vector<64x32xf32> to vector<32x32xf32>
    %38 = vector.extract_strided_slice %36 {offsets = [32, 0], sizes = [32, 32], strides = [1, 1]} : vector<64x32xf32> to vector<32x32xf32>
    %39 = vector.extract_strided_slice %3 {offsets = [0, 0], sizes = [32, 17], strides = [1, 1]} : vector<96x49xf32> to vector<32x17xf32>
    %40 = vector.extract_strided_slice %2 {offsets = [0, 0], sizes = [32, 32], strides = [1, 1]} : vector<96x32xf32> to vector<32x32xf32>
    %41 = arith.mulf %37, %1 : vector<32x32xf32>
    %cst_15 = arith.constant dense<0.000000e+00> : vector<32x32xf32>
    %42 = tpu.matmul %40, %41, %cst_15 {dimension_numbers = #tpu.dot_dimension_numbers<[1], [0], [0], [1], [0, 0, 1, 1], [], []>} : vector<32x32xf32>, vector<32x32xf32>, vector<32x32xf32> -> vector<32x32xf32>
    %c0_16 = arith.constant 0 : index
    %c0_17 = arith.constant 0 : index
    %43 = vector.load %arg6[%c0_16, %c0_17] : memref<17x32xf32, #tpu.memory_space<vmem>>, vector<17x32xf32>
    %cst_18 = arith.constant dense<0.000000e+00> : vector<32x32xf32>
    %44 = tpu.matmul %39, %43, %cst_18 {dimension_numbers = #tpu.dot_dimension_numbers<[1], [0], [0], [1], [0, 0, 1, 1], [], []>} : vector<32x17xf32>, vector<17x32xf32>, vector<32x32xf32> -> vector<32x32xf32>
    %c0_19 = arith.constant 0 : index
    %c0_20 = arith.constant 0 : index
    %45 = vector.load %arg7[%c0_19, %c0_20] : memref<32x32xf32, #tpu.memory_space<vmem>>, vector<32x32xf32>
    %cst_21 = arith.constant dense<0.000000e+00> : vector<32x32xf32>
    %46 = tpu.matmul %42, %45, %cst_21 {dimension_numbers = #tpu.dot_dimension_numbers<[1], [0], [0], [1], [0, 0, 1, 1], [], []>} : vector<32x32xf32>, vector<32x32xf32>, vector<32x32xf32> -> vector<32x32xf32>
    %47 = arith.addf %44, %46 : vector<32x32xf32>
    %c0_22 = arith.constant 0 : index
    %c0_23 = arith.constant 0 : index
    %48 = vector.load %arg8[%c0_22, %c0_23] : memref<1x32xf32, #tpu.memory_space<vmem>>, vector<1x32xf32>
    %49 = vector.broadcast %48 : vector<1x32xf32> to vector<32x32xf32>
    %50 = arith.addf %47, %49 : vector<32x32xf32>
    %51 = math.tanh %50 : vector<32x32xf32>
    %52 = arith.mulf %38, %1 : vector<32x32xf32>
    %cst_24 = arith.constant 1.000000e+00 : f32
    %53 = vector.broadcast %cst_24 : f32 to vector<32x32xf32>
    %54 = arith.subf %53, %38 : vector<32x32xf32>
    %55 = arith.mulf %54, %51 : vector<32x32xf32>
    %56 = arith.addf %52, %55 : vector<32x32xf32>
    %c0_25 = arith.constant 0 : index
    %c0_26 = arith.constant 0 : index
    %57 = vector.load %arg9[%c0_25, %c0_26] : memref<32x32xf32, #tpu.memory_space<vmem>>, vector<32x32xf32>
    tpu.vector_store %arg9[%c0_25, %c0_26], %56 {strides = array<i32>} : memref<32x32xf32, #tpu.memory_space<vmem>>, vector<32x32xf32>,
    return
  }
  func.func @transform_0(%arg0: i32) -> (i32, i32) {
    %c0_i32 = arith.constant 0 : i32
    %c0_i32_0 = arith.constant 0 : i32
    return %arg0, %c0_i32 : i32, i32
  }
  func.func @transform_1(%arg0: i32) -> (i32, i32) {
    %c0_i32 = arith.constant 0 : i32
    %c0_i32_0 = arith.constant 0 : i32
    return %arg0, %c0_i32 : i32, i32
  }
  func.func @transform_2(%arg0: i32) -> (i32, i32) {
    %c0_i32 = arith.constant 0 : i32
    %c0_i32_0 = arith.constant 0 : i32
    %c0_i32_1 = arith.constant 0 : i32
    return %c0_i32, %c0_i32_0 : i32, i32
  }
  func.func @transform_3(%arg0: i32) -> (i32, i32) {
    %c0_i32 = arith.constant 0 : i32
    %c0_i32_0 = arith.constant 0 : i32
    %c0_i32_1 = arith.constant 0 : i32
    return %c0_i32, %c0_i32_0 : i32, i32
  }
  func.func @transform_4(%arg0: i32) -> (i32, i32) {
    %c0_i32 = arith.constant 0 : i32
    %c0_i32_0 = arith.constant 0 : i32
    %c0_i32_1 = arith.constant 0 : i32
    return %c0_i32, %c0_i32_0 : i32, i32
  }
  func.func @transform_5(%arg0: i32) -> (i32, i32) {
    %c0_i32 = arith.constant 0 : i32
    %c0_i32_0 = arith.constant 0 : i32
    %c0_i32_1 = arith.constant 0 : i32
    return %c0_i32, %c0_i32_0 : i32, i32
  }
  func.func @transform_6(%arg0: i32) -> (i32, i32) {
    %c0_i32 = arith.constant 0 : i32
    %c0_i32_0 = arith.constant 0 : i32
    %c0_i32_1 = arith.constant 0 : i32
    return %c0_i32, %c0_i32_0 : i32, i32
  }
  func.func @transform_7(%arg0: i32) -> (i32, i32) {
    %c0_i32 = arith.constant 0 : i32
    %c0_i32_0 = arith.constant 0 : i32
    %c0_i32_1 = arith.constant 0 : i32
    return %c0_i32, %c0_i32_0 : i32, i32
  }
  func.func @transform_8(%arg0: i32) -> (i32, i32) {
    %c0_i32 = arith.constant 0 : i32
    %c0_i32_0 = arith.constant 0 : i32
    return %arg0, %c0_i32 : i32, i32
  }
}

</mosaic_0001>

<bundles_post_ra>
// kernel: tpu_custom_call.1
= control target key start
LH: loop header
LB: loop body
LE: loop exit
PB: predicated region body
PF: predicated region fallthrough
CT: control target
= control target key end

     0   :  { %13 = vsyncpa [#allocation3], 0  ;;  %s1554_s0 = inlined_call_operand.vmem [shape: f32[32,49], index: 0, kind: input, shape index: {}]   ;;  %s1555_s1 = inlined_call_operand.vmem [shape: f32[32,32], index: 1, kind: input, shape index: {}]   ;;  %s1556_s2 = inlined_call_operand.vmem [shape: f32[96,32], index: 2, kind: input, shape index: {}]   ;;  %s1557_s3 = inlined_call_operand.vmem [shape: f32[49,64], index: 3, kind: input, shape index: {}]   ;;  %s1558_s4 = inlined_call_operand.vmem [shape: f32[1,64], index: 4, kind: input, shape index: {}]   ;;  %s1559_s5 = inlined_call_operand.vmem [shape: f32[17,32], index: 5, kind: input, shape index: {}]   ;;  %s1560_s6 = inlined_call_operand.hbm [shape: f32[32,32], index: 6, kind: input, shape index: {}]   ;;  %s1561_s7 = inlined_call_operand.vmem [shape: f32[1,32], index: 7, kind: input, shape index: {}]   ;;  %s1562_s8 = inlined_call_operand.hbm [shape: f32[32,32], index: 8, kind: output, shape index: {}]  }
   0x1   :  { %14 = vsyncpa [#allocation4], 0  ;;  %s1252_s27 = smov [#allocation2]   ;;  %s1204_s9 = scalar_lea.hbm %s1560_s6, 512 }
   0x2   :  { %s32_s28 = sshll.u32 %s1252_s27, 4  ;;  %p1205_p0 = scmp.ne.s32.totalorder %s1560_s6, %s1204_s9  ;;  %s33_s28 = int_to_ptr.vmem [resolvable:$true] %s32_s28 }
   0x3   :  { %p1208_p1 = scmp.lt.u32.totalorder %s1204_s9, %s1560_s6 }
   0x5   :  { %p1210_p2 = pnand %p1208_p1, %p1205_p0 }
   0x7   :  { %1213 = shalt.err (!%p1210_p2)
}
   0x8   :  { %s1214_s14 = scalar_lea.vmem %s33_s28, 512  ;;  %p1219_p4 = scmp.lt.s32.totalorder %s33_s28, %s33_s28 }
   0x9   :  { %p1215_p3 = scmp.ne.s32.totalorder %s33_s28, %s1214_s14  ;;  %p1220_p5 = scmp.lt.s32.totalorder %s1214_s14, %s1214_s14 }
   0xb   :  { %p1221_p6 = por %p1220_p5, %p1219_p4 }
   0xd   :  { %p1222_p7 = pnand %p1221_p6, %p1215_p3 }
   0xf   :  { %1225 = shalt.err (!%p1222_p7)
}
  0x10   :  { %s1253_s15 = smov 128   ;;  %s1254_s16 = smov 8  }
  0x11   :  { %38 = dma.hbm_to_vmem [thread:$0]  %s1560_s6, 512, %s33_s28, [#allocation3], %s1253_s15, %s1253_s15, %s1254_s16  }
  0x12   :  { %1248 = dma.done.wait [#allocation3], 512  }
  0x13   :  { %1249 = vsyncadd [#allocation3], 4294966784  ;;  %vm64_vm0 = vcmask 261120   ;;  %v44_v0 = vld [vmem:[%s1554_s0] sm:$0xff]  ;;  %v45_v1 = vld [vmem:[%s1554_s0 + $0x8] sm:$0xff]  ;;  %vm265_vm1 = vcmask 1040384  }
  0x14   :  { %v46_v2 = vld [vmem:[%s1554_s0 + $0x10] sm:$0xff]  ;;  %v1111_v3 = vpack.c.bf16 %v45_v1, %v44_v0  ;;  %v47_v4 = vld [vmem:[%s1554_s0 + $0x18] sm:$0xff]  ;;  %v1332_v5 = vld [vmem:[%s1556_s2] sm:$0xff]  ;;  %vm240_vm2 = vcmask 400384   ;;  %s1255_s21 = smov 96   ;;  %v374_v1 = vlaneseq  ;;  %vm768_vm7 = vcmask 138240  }
  0x15   :  { %v1115_v6 = vpack.c.bf16 %v47_v4, %v46_v2  ;;  %1027 = vmatprep.mubr.msk.f32.mxu0 %vm64_vm0, %v1332_v5  ;;  %v226_v7 = vld [vmem:[%s1557_s3] sm:$0xff]  ;;  %v227_v8 = vld [vmem:[%s1557_s3 + $0x8] sm:$0xff]  ;;  %v1350_v11 = vld [vmem:[%s1556_s2 + $0x10] sm:$0xff] }
  0x16   :  { %1112 = vmatprep.subr.bf16.mxu0 %v1111_v3  ;;  %v1119_v9 = vpack.c.bf16 %v227_v8, %v226_v7  ;;  %v1345_v10 = vld [vmem:[%s1556_s2 + $0x8] sm:$0xff]  ;;  %v1359_v12 = vld [vmem:[%s1556_s2 + $0x18] sm:$0xff]  ;;  %v56_v13 = vld [vmem:[%s1556_s2 + $0x20] sm:$0xff] }
  0x17   :  { %1114 = vmatpush3.bf16.msra.mxu0 %v1111_v3  ;;  %v57_v14 = vld [vmem:[%s1556_s2 + $0x28] sm:$0xff]  ;;  %v58_v15 = vld [vmem:[%s1556_s2 + $0x30] sm:$0xff]  ;;  %v59_v16 = vld [vmem:[%s1556_s2 + $0x38] sm:$0xff]  ;;  %v1462_v3 = vshrl.u32 %v374_v1, 7 }
  0x18   :  { %1116 = vmatprep.subr.bf16.mxu0 %v1115_v6  ;;  %1120 = vmatprep.subr.bf16.mxu1 %v1119_v9  ;;  %v228_v17 = vld [vmem:[%s1557_s3 + $0x10] sm:$0xff]  ;;  %v229_v18 = vld [vmem:[%s1557_s3 + $0x18] sm:$0xff]  ;;  %v230_v20 = vld [vmem:[%s1557_s3 + $0x20] sm:$0xff] }
  0x19   :  { %1122 = vmatpush3.bf16.msra.mxu1 %v1119_v9  ;;  %v1123_v19 = vpack.c.bf16 %v229_v18, %v228_v17  ;;  %v231_v21 = vld [vmem:[%s1557_s3 + $0x28] sm:$0xff]  ;;  %v232_v23 = vld [vmem:[%s1557_s3 + $0x30] sm:$0x1]  ;;  %v60_v24 = vld [vmem:[%s1556_s2 + $0x40] sm:$0xff]  ;;  %v387_v4 = vand.u32 1, %v1462_v3  ;;  %v378_v9 = vadd.s32 24, %v1462_v3 }
  0x1a   :  { %v1127_v22 = vpack.c.bf16 %v231_v21, %v230_v20  ;;  %v61_v25 = vld [vmem:[%s1556_s2 + $0x48] sm:$0xff]  ;;  %v62_v26 = vld [vmem:[%s1556_s2 + $0x50] sm:$0xff]  ;;  %v63_v27 = vld [vmem:[%s1556_s2 + $0x58] sm:$0xff] }
  0x1b   :  { %1118 = vmatpush3.bf16.msra.mxu0 %v1115_v6  ;;  %1124 = vmatprep.subr.bf16.mxu1 %v1123_v19  ;;  %v933_v40 = vld [vmem:[%s1558_s4] ss:$0 sm:$0xff]  ;;  %v668_v50 = vld [vmem:[#allocation2 + $0x8] sm:$0xff]  ;;  %v669_v51 = vld [vmem:[#allocation2 + $0x10] sm:$0xff]  ;;  %v377_v6 = vadd.s32 16, %v1462_v3  ;;  %vm479_vm3 = vcmp.eq.s32.totalorder %v387_v4, 0 }
  0x1c   :  { %v667_v49 = vld [vmem:[#allocation2] sm:$0xff]  ;;  %v670_v53 = vld [vmem:[#allocation2 + $0x18] sm:$0xff]  ;;  %v665_v56 = vld [vmem:[%s1559_s5 + $0x8] sm:$0xff] }
  0x1d   :  { %1126 = vmatpush3.bf16.msra.mxu1 %v1123_v19  ;;  %v1139_v52 = vpack.c.bf16 %v668_v50, %v667_v49  ;;  %v1143_v54 = vpack.c.bf16 %v670_v53, %v669_v51  ;;  %v664_v55 = vld [vmem:[%s1559_s5] sm:$0xff]  ;;  %v401_v8 = vand.u32 1, %v377_v6 }
  0x1e   :  { %1028 = vmatmul.mubr.msk.f32.vlgmr.msra.gmra.mrb[0].mxu0 %vm64_vm0, %v1345_v10  ;;  %1128 = vmatprep.subr.bf16.mxu1 %v1127_v22  ;;  %v1443_v57 = vpack.c.bf16 %v665_v56, %v664_v55  ;;  %v381_v55 = vadd.s32 48, %v1462_v3  ;;  %v380_v56 = vadd.s32 40, %v1462_v3 }
  0x1f   :  { %1030 = vmatprep.mubr.msk.f32.mxu0 %vm64_vm0, %v1350_v11  ;;  %1140 = vmatprep.subr.bf16.mxu0 %v1139_v52  ;;  %vm481_vm5 = vcmp.eq.s32.totalorder %v401_v8, 0 }
  0x20   :  { %1142 = vmatpush3.bf16.msra.mxu0 %v1139_v52  ;;  %v666_v52 = vld [vmem:[%s1559_s5 + $0x10] sm:$0x1] }
  0x21   :  { %1130 = vmatpush3.bf16.msra.mxu1 %v1127_v22  ;;  %1144 = vmatprep.subr.bf16.mxu0 %v1143_v54 }
  0x22   :  { %1031 = vmatmul.mubr.msk.f32.gmra.mrb[2].mxu0 %vm64_vm0, %v1359_v12  ;;  %1057 = vmatprep.subr.msk.mxu1 %vm265_vm1, %v232_v23 }
  0x23   :  { %1033 = vmatprep.mubr.msk.f32.mxu0 %vm64_vm0, %v56_v13 }
  0x24   :  { %1146 = vmatpush3.bf16.msra.mxu0 %v1143_v54 }
  0x25   :  { %1058 = vmatpush3.msk.msra.mxu1 %vm265_vm1, %v232_v23  ;;  %1148 = vmatprep.subr.bf16.mxu0 %v1443_v57 }
  0x26   :  { %1034 = vmatmul.mubr.msk.f32.gmra.mrb[4].mxu0 %vm64_vm0, %v57_v14 }
  0x27   :  { %1036 = vmatprep.mubr.msk.f32.mxu0 %vm64_vm0, %v58_v15 }
  0x2a   :  { %1037 = vmatmul.mubr.msk.f32.gmra.mrb[6].mxu0 %vm64_vm0, %v59_v16  ;;  %v408_v16 = vand.u32 1, %v378_v9 }
  0x2b   :  { %1039 = vmatprep.mubr.msk.f32.mxu0 %vm64_vm0, %v60_v24 }
  0x2c   :  { %vm482_vm6 = vcmp.eq.s32.totalorder %v408_v16, 0 }
  0x2e   :  { %1040 = vmatmul.mubr.msk.f32.gmra.mrb[8].mxu0 %vm64_vm0, %v61_v25 }
  0x2f   :  { %1042 = vmatprep.mubr.msk.f32.mxu0 %vm64_vm0, %v62_v26 }
  0x32   :  { %1043 = vmatmul.mubr.msk.f32.gmra.mrb[10].mxu0 %vm64_vm0, %v63_v27 }
  0xf1   :  { %v1412_v28 = vpop.f32.mrb[0].mxu0 }
  0xf2   :  { %v1414_v29 = vpop.f32.mrb[1].mxu0 }
  0xf5   :  { %v1416_v30 = vpop.f32.mrb[2].mxu0 }
  0xf6   :  { %v1418_v31 = vpop.f32.mrb[3].mxu0 }
  0xf9   :  { %v1035_v32 = vpop.f32.mrb[4].mxu0 }
  0xfa   :  { %v187_v33 = vpop.f32.mrb[5].mxu0 }
  0xfb   :  { %1059 = vmatprep.mubr.msk.f32.mxu1 %vm240_vm2, %v187_v33 }
  0xfc   :  { %1060 = vmatmul.mubr.msk.f32.vlgmr.msra.gmra.mrb[0].mxu1 %vm240_vm2, %v1035_v32 }
  0xfd   :  { %v1038_v34 = vpop.f32.mrb[6].mxu0 }
  0xfe   :  { %v197_v35 = vpop.f32.mrb[7].mxu0 }
  0xff   :  { %1062 = vmatprep.mubr.msk.f32.mxu1 %vm240_vm2, %v197_v35 }
 0x100   :  { %1063 = vmatmul.mubr.msk.f32.gmra.mrb[2].mxu1 %vm240_vm2, %v1038_v34 }
 0x101   :  { %v1041_v36 = vpop.f32.mrb[8].mxu0 }
 0x102   :  { %v207_v37 = vpop.f32.mrb[9].mxu0 }
 0x103   :  { %1065 = vmatprep.mubr.msk.f32.mxu1 %vm240_vm2, %v207_v37 }
 0x104   :  { %1066 = vmatmul.mubr.msk.f32.gmra.mrb[4].mxu1 %vm240_vm2, %v1041_v36 }
 0x105   :  { %v1044_v38 = vpop.f32.mrb[10].mxu0 }
 0x106   :  { %v217_v39 = vpop.f32.mrb[11].mxu0 }
 0x107   :  { %1068 = vmatprep.mubr.msk.f32.mxu1 %vm240_vm2, %v217_v39  ;;  %v1471_v39 = vld [vmem:[%s1555_s1] sm:$0xff] }
 0x108   :  { %1069 = vmatmul.mubr.msk.f32.gmra.mrb[6].mxu1 %vm240_vm2, %v1044_v38 }
 0x109   :  { %1079 = vmatprep.mubr.msk.f32.mxu1 %vm64_vm0, %v1332_v5  ;;  %v376_v5 = vadd.s32 8, %v1462_v3 }
 0x10b   :  { %v394_v7 = vand.u32 1, %v376_v5 }
 0x10d   :  { %vm480_vm4 = vcmp.eq.s32.totalorder %v394_v7, 0 }
 0x1cf   :  { %v1061_v41 = vpop.f32.mrb[0].mxu1 }
 0x1d0   :  { %v335_v42 = vpop.f32.mrb[1].mxu1  ;;  %v341_v46 = vadd.f32 %v1061_v41, %v933_v40 }
 0x1d1   :  { %v336_v43 = vadd.f32 %v933_v40, %v335_v42 }
 0x1d3   :  { %495 = vrot.lane.b32.xlu0 %v336_v43, %s1255_s21  ;;  %v1064_v44 = vpop.f32.mrb[2].mxu1 }
 0x1d4   :  { %v345_v45 = vpop.f32.mrb[3].mxu1  ;;  %v351_v48 = vadd.f32 %v1064_v44, %v933_v40 }
 0x1d5   :  { %v346_v47 = vadd.f32 %v933_v40, %v345_v45  ;;  %v1483_v45 = vld [vmem:[%s1555_s1 + $0x10] sm:$0xff] }
 0x1d7   :  { %497 = vrot.lane.b32.xlu0 %v341_v46, %s1255_s21  ;;  %499 = vrot.lane.b32.xlu1 %v346_v47, %s1255_s21  ;;  %v1067_v58 = vpop.f32.mrb[4].mxu1 }
 0x1d8   :  { %v1446_v59 = vadd.f32 %v1067_v58, %v933_v40  ;;  %v355_v60 = vpop.f32.mrb[5].mxu1  ;;  %v379_v58 = vadd.s32 32, %v1462_v3 }
 0x1d9   :  { %v1448_v61 = vadd.f32 %v933_v40, %v355_v60 }
 0x1da   :  { %v415_v1 = vand.u32 1, %v379_v58 }
 0x1db   :  { %501 = vrot.lane.b32.xlu1 %v351_v48, %s1255_s21  ;;  %503 = vrot.lane.b32.xlu0 %v1448_v61, %s1255_s21  ;;  %v1070_v62 = vpop.f32.mrb[6].mxu1 }
 0x1dc   :  { %v1454_v63 = vadd.f32 %v1070_v62, %v933_v40  ;;  %v365_v0 = vpop.f32.mrb[7].mxu1  ;;  %vm483_vm11 = vcmp.eq.s32.totalorder %v415_v1, 0 }
 0x1dd   :  { %v1456_v2 = vadd.f32 %v933_v40, %v365_v0  ;;  %v1476_v40 = vld [vmem:[%s1555_s1 + $0x8] sm:$0xff]  ;;  %v429_v0 = vand.u32 1, %v381_v55 }
 0x1df   :  { %505 = vrot.lane.b32.xlu1 %v1446_v59, %s1255_s21  ;;  %507 = vrot.lane.b32.xlu0 %v1456_v2, %s1255_s21  ;;  %vm485_vm9 = vcmp.eq.s32.totalorder %v429_v0, 0 }
 0x1e3   :  { %509 = vrot.lane.b32.xlu1 %v1454_v63, %s1255_s21 }
 0x245   :  { %v496_v13 = vpop.permute.xlu0 %495 }
 0x246   :  { %v519_v14 = vsel %vm479_vm3, %v336_v43, %v496_v13 }
 0x247   :  { %v943_v15 = vmul.f32 -1.442695, %v519_v14 }
 0x249   :  { %1164 = vpow2.f32 %v943_v15  ;;  %v498_v17 = vpop.permute.xlu0 %497  ;;  %v500_v18 = vpop.permute.xlu1 %499 }
 0x24a   :  { %v520_v19 = vsel %vm480_vm4, %v341_v46, %v498_v17  ;;  %v521_v20 = vsel %vm481_vm5, %v346_v47, %v500_v18  ;;  %v1488_v46 = vld [vmem:[%s1555_s1 + $0x18] sm:$0xff] }
 0x24b   :  { %v944_v21 = vmul.f32 -1.442695, %v520_v19  ;;  %v945_v22 = vmul.f32 -1.442695, %v521_v20 }
 0x24d   :  { %1166 = vpow2.f32 %v944_v21  ;;  %v502_v23 = vpop.permute.xlu1 %501  ;;  %v504_v60 = vpop.permute.xlu0 %503 }
 0x24e   :  { %1168 = vpow2.f32 %v945_v22  ;;  %v522_v24 = vsel %vm482_vm6, %v351_v48, %v502_v23  ;;  %v523_v8 = vsel %vm483_vm11, %v1448_v61, %v504_v60 }
 0x24f   :  { %v946_v25 = vmul.f32 -1.442695, %v522_v24  ;;  %v947_v14 = vmul.f32 -1.442695, %v523_v8 }
 0x251   :  { %1170 = vpow2.f32 %v946_v25  ;;  %v508_v5 = vpop.permute.xlu0 %507 }
 0x252   :  { %v525_v6 = vsel %vm485_vm9, %v1456_v2, %v508_v5 }
 0x253   :  { %v1165_v26 = vpop.eup %1164  ;;  %v949_v9 = vmul.f32 -1.442695, %v525_v6 }
 0x254   :  { %v551_v27 = vadd.f32 1.0, %v1165_v26 }
 0x256   :  { %1172 = vrcp.f32 %v551_v27 }
 0x257   :  { %v1167_v32 = vpop.eup %1166 }
 0x258   :  { %v1169_v33 = vpop.eup %1168  ;;  %v552_v34 = vadd.f32 1.0, %v1167_v32 }
 0x259   :  { %v553_v35 = vadd.f32 1.0, %v1169_v33 }
 0x25a   :  { %1174 = vrcp.f32 %v552_v34 }
 0x25b   :  { %v1171_v36 = vpop.eup %1170  ;;  %1176 = vrcp.f32 %v553_v35 }
 0x25c   :  { %v554_v37 = vadd.f32 1.0, %v1171_v36 }
 0x25e   :  { %1178 = vrcp.f32 %v554_v37 }
 0x260   :  { %v1173_v38 = vpop.eup %1172 }
 0x261   :  { %v575_v42 = vmul.f32 %v1173_v38, %v1471_v39 }
 0x264   :  { %v1175_v41 = vpop.eup %1174 }
 0x265   :  { %v576_v43 = vmul.f32 %v1175_v41, %v1476_v40  ;;  %v1177_v44 = vpop.eup %1176 }
 0x266   :  { %v577_v49 = vmul.f32 %v1177_v44, %v1483_v45 }
 0x267   :  { %v1131_v47 = vpack.c.bf16 %v576_v43, %v575_v42 }
 0x268   :  { %v1179_v48 = vpop.eup %1178 }
 0x269   :  { %1132 = vmatprep.subr.bf16.mxu1 %v1131_v47  ;;  %v578_v50 = vmul.f32 %v1179_v48, %v1488_v46 }
 0x26a   :  { %1134 = vmatpush3.bf16.msra.mxu1 %v1131_v47 }
 0x26b   :  { %v1135_v51 = vpack.c.bf16 %v578_v50, %v577_v49 }
 0x26d   :  { %1136 = vmatprep.subr.bf16.mxu1 %v1135_v51 }
 0x26e   :  { %1138 = vmatpush3.bf16.msra.mxu1 %v1135_v51 }
 0x26f   :  { %1151 = vmatprep.subr.bf16.mxu1 %v1443_v57 }
 0x271   :  { %1080 = vmatmul.mubr.msk.f32.vlgmr.msra.gmra.mrb[8].mxu1 %vm64_vm0, %v1345_v10 }
 0x272   :  { %1082 = vmatprep.mubr.msk.f32.mxu1 %vm64_vm0, %v1350_v11  ;;  %1153 = vmatpush3.bf16.msra.mxu1 %v1443_v57 }
 0x273   :  { %1152 = vmatprep.subr.msk.mxu1 %vm265_vm1, %v666_v52 }
 0x275   :  { %1083 = vmatmul.mubr.msk.f32.gmra.mrb[10].mxu1 %vm64_vm0, %v1359_v12 }
 0x276   :  { %1108 = vmatprep.mubr.msk.f32.mxu1 %vm768_vm7, %v1418_v31  ;;  %1154 = vmatpush3.msk.msra.mxu1 %vm265_vm1, %v666_v52  ;;  %v382_v31 = vadd.s32 56, %v1462_v3 }
 0x278   :  { %v436_v62 = vand.u32 1, %v382_v31 }
 0x279   :  { %1109 = vmatmul.mubr.msk.f32.vlgmr.msra.gmra.mrb[12].mxu1 %vm768_vm7, %v1416_v30 }
 0x27a   :  { %vm486_vm8 = vcmp.eq.s32.totalorder %v436_v62, 0 }
 0x344   :  { %v1081_v10 = vpop.f32.mrb[8].mxu1 }
 0x345   :  { %v645_v53 = vpop.f32.mrb[9].mxu1 }
 0x346   :  { %1093 = vmatprep.mubr.msk.f32.mxu0 %vm64_vm0, %v645_v53 }
 0x347   :  { %1094 = vmatmul.mubr.msk.f32.vlgmr.msra.gmra.mrb[12].mxu0 %vm64_vm0, %v1081_v10 }
 0x348   :  { %v1084_v11 = vpop.f32.mrb[10].mxu1  ;;  %1150 = vmatpush3.bf16.msra.mxu0 %v1443_v57  ;;  %v506_v57 = vpop.permute.xlu1 %505 }
 0x349   :  { %v655_v54 = vpop.f32.mrb[11].mxu1  ;;  %1103 = vmatprep.subr.msk.mxu0 %vm265_vm1, %v666_v52 }
 0x34a   :  { %1096 = vmatprep.mubr.msk.f32.mxu0 %vm64_vm0, %v655_v54 }
 0x34b   :  { %1097 = vmatmul.mubr.msk.f32.gmra.mrb[14].mxu0 %vm64_vm0, %v1084_v11 }
 0x34c   :  { %1105 = vmatprep.mubr.msk.f32.mxu0 %vm768_vm7, %v1414_v29  ;;  %v1110_v12 = vpop.f32.mrb[12].mxu1  ;;  %1104 = vmatpush3.msk.msra.mxu0 %vm265_vm1, %v666_v52  ;;  %v422_v29 = vand.u32 1, %v380_v56  ;;  %v510_v4 = vpop.permute.xlu1 %509 }
 0x34d   :  { %v860_v30 = vpop.f32.mrb[13].mxu1 }
 0x34e   :  { %vm484_vm10 = vcmp.eq.s32.totalorder %v422_v29, 0 }
 0x34f   :  { %1106 = vmatmul.mubr.msk.f32.vlgmr.msra.gmra.mrb[12].mxu0 %vm768_vm7, %v1412_v28  ;;  %v526_v28 = vsel %vm486_vm8, %v1454_v63, %v510_v4  ;;  %v524_v7 = vsel %vm484_vm10, %v1446_v59, %v506_v57  ;;  %v964_v59 = vld [vmem:[%s1561_s7] ss:$0 sm:$0xff]  ;;  %s1256_s7 = smov [#allocation5]  }
 0x350   :  { %v950_v3 = vmul.f32 -1.442695, %v526_v28  ;;  %v948_v13 = vmul.f32 -1.442695, %v524_v7  ;;  %s909_s11 = sshll.u32 %s1256_s7, 4  ;;  %s910_s11 = int_to_ptr.vmem [resolvable:$true] %s909_s11 }
 0x351   :  { %s1226_s12 = scalar_lea.vmem %s910_s11, 512  ;;  %p1231_p9 = scmp.lt.s32.totalorder %s910_s11, %s910_s11 }
 0x352   :  { %1180 = vpow2.f32 %v950_v3  ;;  %p1227_p8 = scmp.ne.s32.totalorder %s910_s11, %s1226_s12  ;;  %p1232_p10 = scmp.lt.s32.totalorder %s1226_s12, %s1226_s12 }
 0x353   :  { %1182 = vpow2.f32 %v949_v9 }
 0x354   :  { %1184 = vpow2.f32 %v948_v13  ;;  %p1233_p11 = por %p1232_p10, %p1231_p9 }
 0x355   :  { %1186 = vpow2.f32 %v947_v14 }
 0x356   :  { %p1234_p12 = pnand %p1233_p11, %p1227_p8 }
 0x35c   :  { %v1181_v15 = vpop.eup %1180 }
 0x35d   :  { %v1183_v16 = vpop.eup %1182  ;;  %v558_v19 = vadd.f32 1.0, %v1181_v15 }
 0x35e   :  { %v1185_v17 = vpop.eup %1184  ;;  %v557_v63 = vadd.f32 1.0, %v1183_v16 }
 0x35f   :  { %v1187_v18 = vpop.eup %1186  ;;  %v556_v20 = vadd.f32 1.0, %v1185_v17  ;;  %1188 = vrcp.f32 %v558_v19 }
 0x360   :  { %v555_v2 = vadd.f32 1.0, %v1187_v18  ;;  %1190 = vrcp.f32 %v557_v63 }
 0x361   :  { %1192 = vrcp.f32 %v556_v20 }
 0x362   :  { %1194 = vrcp.f32 %v555_v2 }
 0x369   :  { %v1189_v34 = vpop.eup %1188 }
 0x36a   :  { %v1191_v35 = vpop.eup %1190  ;;  %v891_v38 = vsub.f32 1.0, %v1189_v34  ;;  %v887_v48 = vmul.f32 %v1189_v34, %v1488_v46 }
 0x36b   :  { %v1193_v36 = vpop.eup %1192  ;;  %v890_v42 = vsub.f32 1.0, %v1191_v35  ;;  %v886_v52 = vmul.f32 %v1191_v35, %v1483_v45 }
 0x36c   :  { %v1195_v37 = vpop.eup %1194  ;;  %v889_v47 = vsub.f32 1.0, %v1193_v36  ;;  %v885_v11 = vmul.f32 %v1193_v36, %v1476_v40 }
 0x36d   :  { %v888_v51 = vsub.f32 1.0, %v1195_v37 }
 0x41e   :  { %v1098_v21 = vpop.f32.mrb[14].mxu0 }
 0x41f   :  { %v866_v61 = vadd.f32 %v1110_v12, %v1098_v21  ;;  %v759_v22 = vpop.f32.mrb[15].mxu0 }
 0x420   :  { %v861_v23 = vadd.f32 %v860_v30, %v759_v22  ;;  %v884_v30 = vmul.f32 %v1195_v37, %v1471_v39 }
 0x421   :  { %v879_v24 = vadd.f32 %v964_v59, %v866_v61 }
 0x422   :  { %v878_v25 = vadd.f32 %v964_v59, %v861_v23  ;;  %v1107_v26 = vpop.f32.mrb[12].mxu0 }
 0x423   :  { %1196 = vtanh.f32 %v879_v24  ;;  %v877_v27 = vadd.f32 %v1107_v26, %v964_v59  ;;  %v850_v32 = vpop.f32.mrb[13].mxu0 }
 0x424   :  { %1198 = vtanh.f32 %v878_v25  ;;  %v876_v33 = vadd.f32 %v964_v59, %v850_v32 }
 0x425   :  { %1200 = vtanh.f32 %v877_v27 }
 0x426   :  { %1202 = vtanh.f32 %v876_v33 }
 0x42d   :  { %v1197_v41 = vpop.eup %1196 }
 0x42e   :  { %v1199_v43 = vpop.eup %1198  ;;  %v895_v44 = vmul.f32 %v1197_v41, %v891_v38 }
 0x42f   :  { %v1201_v49 = vpop.eup %1200  ;;  %v894_v50 = vmul.f32 %v1199_v43, %v890_v42 }
 0x430   :  { %v1203_v10 = vpop.eup %1202  ;;  %v893_v53 = vmul.f32 %v1201_v49, %v889_v47  ;;  %v899_v54 = vadd.f32 %v895_v44, %v887_v48 }
 0x431   :  { %v892_v12 = vmul.f32 %v1203_v10, %v888_v51  ;;  %v898_v31 = vadd.f32 %v894_v50, %v886_v52 }
 0x432   :  { %v897_v55 = vadd.f32 %v893_v53, %v885_v11  ;;  %903 = vst.msk [vmem:[#allocation5 + $0x18] sm:$0xff] %vm64_vm0, %v899_v54 }
 0x433   :  { %v896_v46 = vadd.f32 %v892_v12, %v884_v30  ;;  %902 = vst.msk [vmem:[#allocation5 + $0x10] sm:$0xff] %vm64_vm0, %v898_v31 }
 0x434   :  { %901 = vst.msk [vmem:[#allocation5 + $0x8] sm:$0xff] %vm64_vm0, %v897_v55 }
 0x435   :  { %900 = vst.msk [vmem:[#allocation5] sm:$0xff] %vm64_vm0, %v896_v46 }
 0x436   :  { %1237 = shalt.err (!%p1234_p12)
}
 0x437   :  { %s1238_s17 = scalar_lea.hbm %s1562_s8, 512 }
 0x438   :  { %p1239_p13 = scmp.ne.s32.totalorder %s1562_s8, %s1238_s17  ;;  %p1242_p0 = scmp.lt.u32.totalorder %s1238_s17, %s1562_s8 }
 0x43a   :  { %p1244_p1 = pnand %p1242_p0, %p1239_p13 }
 0x43c   :  { %1247 = shalt.err (!%p1244_p1)
}
 0x43d   :  { %915 = dma.vmem_to_hbm [thread:$0]  %s910_s11, 512, %s1562_s8, [#allocation4], %s1253_s15, %s1253_s15, %s1254_s16  }
 0x43e   :  { %1250 = dma.done.wait [#allocation4], 512  }
 0x43f   :  { %1251 = vsyncadd [#allocation4], 4294966784 }
 0x440   :  { %919 = vsyncpa [#allocation3], 1 }
 0x441   :  { %920 = vsyncpa [#allocation4], 1 }

</bundles_post_ra>
